<compile_context>
chip_gen: v6e
topology: v6e:2x2x1
jax: 0.10.0
libtpu: 0.0.40
codegen_flags: <defaults>
</compile_context>

<pallas_src>
import functools

import jax
import jax.numpy as jnp
from jax.experimental import pallas as pl
from jax.experimental.pallas import tpu as pltpu

_LANE = 128


def _project3d_kernel(p_ref, pts_ref, out_ref, *, scale_x, scale_y, eps, unit_w):
    """One (batch, row-tile) grid step.

    p_ref   : SMEM (B*12,)           flattened P = (K@T)[:3, :] per batch
    pts_ref : VMEM (1, C, TR, 128)   homogeneous points, channel-major (C=3|4)
    out_ref : VMEM (1, TR, 256)      lane-interleaved (x, y) pixel coords
    """
    b = pl.program_id(0)
    base = b * 12
    p = [p_ref[base + i] for i in range(12)]      # 12 SMEM scalar reads

    x = pts_ref[0, 0]                             # (TR, 128) dense slabs
    y = pts_ref[0, 1]
    z = pts_ref[0, 2]

    # Scalar-broadcast FMAs on the VPU (replaces the (3,4)x(4,N) matmul).
    if unit_w:
        cam_x = p[0] * x + p[1] * y + p[2] * z + p[3]
        cam_y = p[4] * x + p[5] * y + p[6] * z + p[7]
        cam_z = p[8] * x + p[9] * y + p[10] * z + p[11]
    else:
        w = pts_ref[0, 3]
        cam_x = p[0] * x + p[1] * y + p[2] * z + p[3] * w
        cam_y = p[4] * x + p[5] * y + p[6] * z + p[7] * w
        cam_z = p[8] * x + p[9] * y + p[10] * z + p[11] * w

    inv_z = pl.reciprocal(cam_z + eps)            # exact; matches ref at denom→0
    px = cam_x * inv_z * scale_x - 1.0            # (TR, 128)
    py = cam_y * inv_z * scale_y - 1.0

    # Lane interleave -> out[r, 2l] = px[r, l], out[r, 2l+1] = py[r, l].
    # Done as matmuls against 0/1 expansion matrices (robust lowering).  A
    # manual bf16 hi/lo split keeps it exact to ~2^-16 relative with cheap
    # single-pass bf16 MXU dots (fully hidden under the DMA on all gens).
    row = jax.lax.broadcasted_iota(jnp.int32, (_LANE, 2 * _LANE), 0)
    col = jax.lax.broadcasted_iota(jnp.int32, (_LANE, 2 * _LANE), 1)
    e_x = jnp.where(col == 2 * row, 1.0, 0.0).astype(jnp.bfloat16)
    e_y = jnp.where(col == 2 * row + 1, 1.0, 0.0).astype(jnp.bfloat16)

    def _spread(v, e):
        hi = v.astype(jnp.bfloat16)
        lo = (v - hi.astype(jnp.float32)).astype(jnp.bfloat16)
        return (jnp.dot(hi, e, preferred_element_type=jnp.float32)
                + jnp.dot(lo, e, preferred_element_type=jnp.float32))

    out_ref[0] = _spread(px, e_x) + _spread(py, e_y)


def _pick_row_tile(rows_pad, batch):
    """Rows (of 128 points) per grid step.

    Large steps (512-1024 rows, 1.5-3 MiB of traffic) sit near the HBM
    roofline; capped at 1024 so double-buffered VMEM stays ~6 MiB.  For small
    batches keep >= ~4 total grid steps so both v7x TensorCores are fed.
    """
    min_row_steps = max(1, -(-4 // max(batch, 1)))
    tr = 1024
    while tr > 8 and -(-rows_pad // tr) < min_row_steps:
        tr //= 2
    return min(tr, rows_pad)                       # both are multiples of 8


def project3d(points, K, T, *, batch_size, height, width, eps=1e-7,
              assume_unit_w=False):
    """points: (B, 4, H*W) f32, K,T: (B, 4, 4) f32 -> (B, H, W, 2) f32.

    assume_unit_w=True skips reading the homogeneous w row (must be all ones,
    the standard Project3D usage); default False preserves exact semantics.
    """
    B, N = batch_size, height * width
    assert points.shape == (B, 4, N)
    assert K.shape == (B, 4, 4) and T.shape == (B, 4, 4)

    points = points.astype(jnp.float32)

    # Hoisted out of the kernel: P = (K @ T)[:, :3, :] -> 12 floats per batch,
    # flattened 1-D for SMEM (avoids 2-D SMEM padding waste at large B).
    P = jnp.matmul(K.astype(jnp.float32), T.astype(jnp.float32),
                   precision=jax.lax.Precision.HIGHEST)[:, :3, :]
    P_flat = P.reshape(B * 12)

    # Lane-dense tiling of the point axis; rows rounded to a multiple of 8 so
    # every block keeps clean (8,128) sublane tiles (ragged last *block* is
    # still handled by Pallas masking).  Standard image sizes need no padding.
    rows = -(-N // _LANE)
    rows_pad = -(-rows // 8) * 8
    n_pad = rows_pad * _LANE

    pts = points
    if n_pad != N:
        # Zero padding is numerically safe (denom = eps -> finite, and padded
        # lanes contribute exactly 0 through the 0/1 expansion matmul).
        pts = jnp.pad(points, ((0, 0), (0, 0), (0, n_pad - N)))
    pts = pts.reshape(B, 4, rows_pad, _LANE)       # free, contiguous reshape

    tile_rows = _pick_row_tile(rows_pad, B)
    n_ch = 3 if assume_unit_w else 4               # skip the w plane if allowed

    kernel = functools.partial(
        _project3d_kernel,
        scale_x=2.0 / (width - 1),
        scale_y=2.0 / (height - 1),
        eps=eps,
        unit_w=assume_unit_w,
    )

    grid = (B, pl.cdiv(rows_pad, tile_rows))
    bytes_accessed = B * (n_pad * (4 * n_ch + 8) + 48)
    flops = B * n_pad * (4 * _LANE * 2 * 2 + 24)   # interleave matmuls + FMAs

    pix = pl.pallas_call(
        kernel,
        out_shape=jax.ShapeDtypeStruct((B, rows_pad, 2 * _LANE), jnp.float32),
        grid_spec=pltpu.PrefetchScalarGridSpec(
            num_scalar_prefetch=0,
            grid=grid,
            in_specs=[
                pl.BlockSpec(memory_space=pltpu.MemorySpace.SMEM),          # P
                pl.BlockSpec((1, n_ch, tile_rows, _LANE),
                             lambda b, r: (b, 0, r, 0)),
            ],
            out_specs=pl.BlockSpec((1, tile_rows, 2 * _LANE),
                                   lambda b, r: (b, r, 0)),
        ),
        compiler_params=pltpu.CompilerParams(
            dimension_semantics=("parallel", "parallel"),
            vmem_limit_bytes=32 * 1024 * 1024),
        cost_estimate=pl.CostEstimate(flops=flops,
                                      transcendentals=B * n_pad,
                                      bytes_accessed=bytes_accessed),
    )(P_flat, pts)

    # Only free contiguous reshapes from here on (no transpose pass).
    pix = pix.reshape(B, n_pad, 2)
    if n_pad != N:
        pix = pix[:, :N, :]
    return pix.reshape(B, height, width, 2)


def _reference(points, K, T, batch_size, height, width, eps=1e-7):
    P = jnp.matmul(K, T, precision=jax.lax.Precision.HIGHEST)[:, :3, :]
    cam = jnp.matmul(P, points, precision=jax.lax.Precision.HIGHEST)
    pix = cam[:, :2, :] / (cam[:, 2:3, :] + eps)
    pix = pix.reshape(batch_size, 2, height, width).transpose(0, 2, 3, 1)
    pix = pix.at[..., 0].divide(width - 1)
    pix = pix.at[..., 1].divide(height - 1)
    return (pix - 0.5) * 2


if __name__ == "__main__":
    B, H, W = 2, 16, 64
    N = H * W
    key = jax.random.PRNGKey(0)
    k1, k2, k3 = jax.random.split(key, 3)

    # Homogeneous 3D points (last row = 1), points in front of camera (z > 0).
    xyz = jax.random.normal(k1, (B, 3, N), dtype=jnp.float32)
    xyz = xyz.at[:, 2, :].set(jnp.abs(xyz[:, 2, :]) + 1.0)
    points = jnp.concatenate([xyz, jnp.ones((B, 1, N), jnp.float32)], axis=1)

    # Deterministic synthetic intrinsics K (4x4) and pose T (4x4).
    Kmat = jnp.tile(
        jnp.array([[0.58 * W, 0.0, 0.5 * W, 0.0],
                   [0.0, 1.92 * H, 0.5 * H, 0.0],
                   [0.0, 0.0, 1.0, 0.0],
                   [0.0, 0.0, 0.0, 1.0]], dtype=jnp.float32)[None],
        (B, 1, 1))
    Tmat = jnp.tile(jnp.eye(4, dtype=jnp.float32)[None], (B, 1, 1))
    Tmat = Tmat.at[:, :3, 3].set(0.1 * jax.random.normal(k3, (B, 3), jnp.float32))

    ref = _reference(points, Kmat, Tmat, B, H, W)

    # Exact module semantics (all 4 point channels read).
    out = project3d(points, Kmat, Tmat, batch_size=B, height=H, width=W)
    out = jax.block_until_ready(out)
    assert out.shape == (B, H, W, 2)
    assert jnp.allclose(out, ref, atol=1e-4, rtol=1e-4), "mismatch vs reference"

    # Fast path: skip the homogeneous-w DMA (valid here since points[:, 3] == 1).
    out_w1 = project3d(points, Kmat, Tmat, batch_size=B, height=H, width=W,
                       assume_unit_w=True)
    out_w1 = jax.block_until_ready(out_w1)
    assert jnp.allclose(out_w1, ref, atol=1e-4, rtol=1e-4), "mismatch (unit_w)"

    print("KERNEL_OK")
</pallas_src>

<mosaic_0001>
module attributes {stable_mosaic.version = 11 : i64} {
  func.func @_project3d_kernel(%arg0: i32, %arg1: i32, %arg2: memref<24xf32, #tpu.memory_space<smem>>, %arg3: memref<1x4x8x128xf32, #tpu.memory_space<vmem>>, %arg4: memref<1x8x256xf32, #tpu.memory_space<vmem>>) attributes {dimension_semantics = [#tpu.dimension_semantics<parallel>, #tpu.dimension_semantics<parallel>], iteration_bounds = array<i64: 2, 1>, scalar_prefetch = 0 : i64, scratch_operands = 0 : i64, tpu.core_type = #tpu.core_type<tc>, window_params = [{transform_indices = @transform_0, window_bounds = array<i64: 24>}, {transform_indices = @transform_1, window_bounds = array<i64: 1, 4, 8, 128>}, {transform_indices = @transform_2, window_bounds = array<i64: 1, 8, 256>}]} {
    %c12_i32 = arith.constant 12 : i32
    %0 = arith.muli %arg0, %c12_i32 : i32
    %c0_i32 = arith.constant 0 : i32
    %1 = arith.addi %0, %c0_i32 : i32
    %2 = arith.index_cast %1 : i32 to index
    %3 = memref.load %arg2[%2] : memref<24xf32, #tpu.memory_space<smem>>
    %c1_i32 = arith.constant 1 : i32
    %4 = arith.addi %0, %c1_i32 : i32
    %5 = arith.index_cast %4 : i32 to index
    %6 = memref.load %arg2[%5] : memref<24xf32, #tpu.memory_space<smem>>
    %c2_i32 = arith.constant 2 : i32
    %7 = arith.addi %0, %c2_i32 : i32
    %8 = arith.index_cast %7 : i32 to index
    %9 = memref.load %arg2[%8] : memref<24xf32, #tpu.memory_space<smem>>
    %c3_i32 = arith.constant 3 : i32
    %10 = arith.addi %0, %c3_i32 : i32
    %11 = arith.index_cast %10 : i32 to index
    %12 = memref.load %arg2[%11] : memref<24xf32, #tpu.memory_space<smem>>
    %c4_i32 = arith.constant 4 : i32
    %13 = arith.addi %0, %c4_i32 : i32
    %14 = arith.index_cast %13 : i32 to index
    %15 = memref.load %arg2[%14] : memref<24xf32, #tpu.memory_space<smem>>
    %c5_i32 = arith.constant 5 : i32
    %16 = arith.addi %0, %c5_i32 : i32
    %17 = arith.index_cast %16 : i32 to index
    %18 = memref.load %arg2[%17] : memref<24xf32, #tpu.memory_space<smem>>
    %c6_i32 = arith.constant 6 : i32
    %19 = arith.addi %0, %c6_i32 : i32
    %20 = arith.index_cast %19 : i32 to index
    %21 = memref.load %arg2[%20] : memref<24xf32, #tpu.memory_space<smem>>
    %c7_i32 = arith.constant 7 : i32
    %22 = arith.addi %0, %c7_i32 : i32
    %23 = arith.index_cast %22 : i32 to index
    %24 = memref.load %arg2[%23] : memref<24xf32, #tpu.memory_space<smem>>
    %c8_i32 = arith.constant 8 : i32
    %25 = arith.addi %0, %c8_i32 : i32
    %26 = arith.index_cast %25 : i32 to index
    %27 = memref.load %arg2[%26] : memref<24xf32, #tpu.memory_space<smem>>
    %c9_i32 = arith.constant 9 : i32
    %28 = arith.addi %0, %c9_i32 : i32
    %29 = arith.index_cast %28 : i32 to index
    %30 = memref.load %arg2[%29] : memref<24xf32, #tpu.memory_space<smem>>
    %c10_i32 = arith.constant 10 : i32
    %31 = arith.addi %0, %c10_i32 : i32
    %32 = arith.index_cast %31 : i32 to index
    %33 = memref.load %arg2[%32] : memref<24xf32, #tpu.memory_space<smem>>
    %c11_i32 = arith.constant 11 : i32
    %34 = arith.addi %0, %c11_i32 : i32
    %35 = arith.index_cast %34 : i32 to index
    %36 = memref.load %arg2[%35] : memref<24xf32, #tpu.memory_space<smem>>
    %c0 = arith.constant 0 : index
    %c0_0 = arith.constant 0 : index
    %c0_1 = arith.constant 0 : index
    %c0_2 = arith.constant 0 : index
    %37 = vector.load %arg3[%c0, %c0_0, %c0_1, %c0_2] : memref<1x4x8x128xf32, #tpu.memory_space<vmem>>, vector<1x1x8x128xf32>
    %38 = vector.shape_cast %37 : vector<1x1x8x128xf32> to vector<8x128xf32>
    %c0_3 = arith.constant 0 : index
    %c1 = arith.constant 1 : index
    %c0_4 = arith.constant 0 : index
    %c0_5 = arith.constant 0 : index
    %39 = vector.load %arg3[%c0_3, %c1, %c0_4, %c0_5] : memref<1x4x8x128xf32, #tpu.memory_space<vmem>>, vector<1x1x8x128xf32>
    %40 = vector.shape_cast %39 : vector<1x1x8x128xf32> to vector<8x128xf32>
    %c0_6 = arith.constant 0 : index
    %c2 = arith.constant 2 : index
    %c0_7 = arith.constant 0 : index
    %c0_8 = arith.constant 0 : index
    %41 = vector.load %arg3[%c0_6, %c2, %c0_7, %c0_8] : memref<1x4x8x128xf32, #tpu.memory_space<vmem>>, vector<1x1x8x128xf32>
    %42 = vector.shape_cast %41 : vector<1x1x8x128xf32> to vector<8x128xf32>
    %c0_9 = arith.constant 0 : index
    %c3 = arith.constant 3 : index
    %c0_10 = arith.constant 0 : index
    %c0_11 = arith.constant 0 : index
    %43 = vector.load %arg3[%c0_9, %c3, %c0_10, %c0_11] : memref<1x4x8x128xf32, #tpu.memory_space<vmem>>, vector<1x1x8x128xf32>
    %44 = vector.shape_cast %43 : vector<1x1x8x128xf32> to vector<8x128xf32>
    %45 = vector.broadcast %3 : f32 to vector<8x128xf32>
    %46 = arith.mulf %45, %38 : vector<8x128xf32>
    %47 = vector.broadcast %6 : f32 to vector<8x128xf32>
    %48 = arith.mulf %47, %40 : vector<8x128xf32>
    %49 = arith.addf %46, %48 : vector<8x128xf32>
    %50 = vector.broadcast %9 : f32 to vector<8x128xf32>
    %51 = arith.mulf %50, %42 : vector<8x128xf32>
    %52 = arith.addf %49, %51 : vector<8x128xf32>
    %53 = vector.broadcast %12 : f32 to vector<8x128xf32>
    %54 = arith.mulf %53, %44 : vector<8x128xf32>
    %55 = arith.addf %52, %54 : vector<8x128xf32>
    %56 = vector.broadcast %15 : f32 to vector<8x128xf32>
    %57 = arith.mulf %56, %38 : vector<8x128xf32>
    %58 = vector.broadcast %18 : f32 to vector<8x128xf32>
    %59 = arith.mulf %58, %40 : vector<8x128xf32>
    %60 = arith.addf %57, %59 : vector<8x128xf32>
    %61 = vector.broadcast %21 : f32 to vector<8x128xf32>
    %62 = arith.mulf %61, %42 : vector<8x128xf32>
    %63 = arith.addf %60, %62 : vector<8x128xf32>
    %64 = vector.broadcast %24 : f32 to vector<8x128xf32>
    %65 = arith.mulf %64, %44 : vector<8x128xf32>
    %66 = arith.addf %63, %65 : vector<8x128xf32>
    %67 = vector.broadcast %27 : f32 to vector<8x128xf32>
    %68 = arith.mulf %67, %38 : vector<8x128xf32>
    %69 = vector.broadcast %30 : f32 to vector<8x128xf32>
    %70 = arith.mulf %69, %40 : vector<8x128xf32>
    %71 = arith.addf %68, %70 : vector<8x128xf32>
    %72 = vector.broadcast %33 : f32 to vector<8x128xf32>
    %73 = arith.mulf %72, %42 : vector<8x128xf32>
    %74 = arith.addf %71, %73 : vector<8x128xf32>
    %75 = vector.broadcast %36 : f32 to vector<8x128xf32>
    %76 = arith.mulf %75, %44 : vector<8x128xf32>
    %77 = arith.addf %74, %76 : vector<8x128xf32>
    %cst = arith.constant 1.000000e-07 : f32
    %78 = vector.broadcast %cst : f32 to vector<8x128xf32>
    %79 = arith.addf %77, %78 : vector<8x128xf32>
    %80 = tpu.reciprocal %79 : vector<8x128xf32> -> vector<8x128xf32>
    %81 = arith.mulf %55, %80 : vector<8x128xf32>
    %cst_12 = arith.constant 0.0317460336 : f32
    %82 = vector.broadcast %cst_12 : f32 to vector<8x128xf32>
    %83 = arith.mulf %81, %82 : vector<8x128xf32>
    %cst_13 = arith.constant 1.000000e+00 : f32
    %84 = vector.broadcast %cst_13 : f32 to vector<8x128xf32>
    %85 = arith.subf %83, %84 : vector<8x128xf32>
    %86 = arith.mulf %66, %80 : vector<8x128xf32>
    %cst_14 = arith.constant 0.13333334 : f32
    %87 = vector.broadcast %cst_14 : f32 to vector<8x128xf32>
    %88 = arith.mulf %86, %87 : vector<8x128xf32>
    %cst_15 = arith.constant 1.000000e+00 : f32
    %89 = vector.broadcast %cst_15 : f32 to vector<8x128xf32>
    %90 = arith.subf %88, %89 : vector<8x128xf32>
    %91 = tpu.iota {dimensions = array<i32: 0>} : vector<128x256xi32>
    %92 = tpu.iota {dimensions = array<i32: 1>} : vector<128x256xi32>
    %c2_i32_16 = arith.constant 2 : i32
    %93 = vector.broadcast %c2_i32_16 : i32 to vector<128x256xi32>
    %94 = arith.muli %93, %91 : vector<128x256xi32>
    %95 = arith.cmpi eq, %92, %94 : vector<128x256xi32>
    %cst_17 = arith.constant 1.000000e+00 : f32
    %cst_18 = arith.constant 0.000000e+00 : f32
    %96 = vector.broadcast %cst_17 : f32 to vector<128x256xf32>
    %97 = vector.broadcast %cst_18 : f32 to vector<128x256xf32>
    %98 = arith.select %95, %96, %97 : vector<128x256xi1>, vector<128x256xf32>
    %99 = arith.truncf %98 : vector<128x256xf32> to vector<128x256xbf16>
    %c2_i32_19 = arith.constant 2 : i32
    %100 = vector.broadcast %c2_i32_19 : i32 to vector<128x256xi32>
    %101 = arith.muli %100, %91 : vector<128x256xi32>
    %c1_i32_20 = arith.constant 1 : i32
    %102 = vector.broadcast %c1_i32_20 : i32 to vector<128x256xi32>
    %103 = arith.addi %101, %102 : vector<128x256xi32>
    %104 = arith.cmpi eq, %92, %103 : vector<128x256xi32>
    %cst_21 = arith.constant 1.000000e+00 : f32
    %cst_22 = arith.constant 0.000000e+00 : f32
    %105 = vector.broadcast %cst_21 : f32 to vector<128x256xf32>
    %106 = vector.broadcast %cst_22 : f32 to vector<128x256xf32>
    %107 = arith.select %104, %105, %106 : vector<128x256xi1>, vector<128x256xf32>
    %108 = arith.truncf %107 : vector<128x256xf32> to vector<128x256xbf16>
    %109 = arith.truncf %85 : vector<8x128xf32> to vector<8x128xbf16>
    %110 = arith.extf %109 : vector<8x128xbf16> to vector<8x128xf32>
    %111 = arith.subf %85, %110 : vector<8x128xf32>
    %112 = arith.truncf %111 : vector<8x128xf32> to vector<8x128xbf16>
    %cst_23 = arith.constant dense<0.000000e+00> : vector<8x256xf32>
    %113 = tpu.matmul %109, %99, %cst_23 {dimension_numbers = #tpu.dot_dimension_numbers<[1], [0], [0], [1], [0, 0, 1, 1], [], []>} : vector<8x128xbf16>, vector<128x256xbf16>, vector<8x256xf32> -> vector<8x256xf32>
    %cst_24 = arith.constant dense<0.000000e+00> : vector<8x256xf32>
    %114 = tpu.matmul %112, %99, %cst_24 {dimension_numbers = #tpu.dot_dimension_numbers<[1], [0], [0], [1], [0, 0, 1, 1], [], []>} : vector<8x128xbf16>, vector<128x256xbf16>, vector<8x256xf32> -> vector<8x256xf32>
    %115 = arith.addf %113, %114 : vector<8x256xf32>
    %116 = arith.truncf %90 : vector<8x128xf32> to vector<8x128xbf16>
    %117 = arith.extf %116 : vector<8x128xbf16> to vector<8x128xf32>
    %118 = arith.subf %90, %117 : vector<8x128xf32>
    %119 = arith.truncf %118 : vector<8x128xf32> to vector<8x128xbf16>
    %cst_25 = arith.constant dense<0.000000e+00> : vector<8x256xf32>
    %120 = tpu.matmul %116, %108, %cst_25 {dimension_numbers = #tpu.dot_dimension_numbers<[1], [0], [0], [1], [0, 0, 1, 1], [], []>} : vector<8x128xbf16>, vector<128x256xbf16>, vector<8x256xf32> -> vector<8x256xf32>
    %cst_26 = arith.constant dense<0.000000e+00> : vector<8x256xf32>
    %121 = tpu.matmul %119, %108, %cst_26 {dimension_numbers = #tpu.dot_dimension_numbers<[1], [0], [0], [1], [0, 0, 1, 1], [], []>} : vector<8x128xbf16>, vector<128x256xbf16>, vector<8x256xf32> -> vector<8x256xf32>
    %122 = arith.addf %120, %121 : vector<8x256xf32>
    %123 = arith.addf %115, %122 : vector<8x256xf32>
    %c0_27 = arith.constant 0 : index
    %c0_28 = arith.constant 0 : index
    %c0_29 = arith.constant 0 : index
    %124 = vector.load %arg4[%c0_27, %c0_28, %c0_29] : memref<1x8x256xf32, #tpu.memory_space<vmem>>, vector<1x8x256xf32>
    %125 = vector.shape_cast %124 : vector<1x8x256xf32> to vector<8x256xf32>
    %126 = vector.shape_cast %123 : vector<8x256xf32> to vector<1x8x256xf32>
    tpu.vector_store %arg4[%c0_27, %c0_28, %c0_29], %126 {strides = array<i32>} : memref<1x8x256xf32, #tpu.memory_space<vmem>>, vector<1x8x256xf32>,
    return
  }
  func.func @transform_0(%arg0: i32, %arg1: i32) -> i32 {
    %c0_i32 = arith.constant 0 : i32
    %c0_i32_0 = arith.constant 0 : i32
    return %c0_i32 : i32
  }
  func.func @transform_1(%arg0: i32, %arg1: i32) -> (i32, i32, i32, i32) {
    %c0_i32 = arith.constant 0 : i32
    %c0_i32_0 = arith.constant 0 : i32
    %c0_i32_1 = arith.constant 0 : i32
    return %arg0, %c0_i32, %arg1, %c0_i32_0 : i32, i32, i32, i32
  }
  func.func @transform_2(%arg0: i32, %arg1: i32) -> (i32, i32, i32) {
    %c0_i32 = arith.constant 0 : i32
    %c0_i32_0 = arith.constant 0 : i32
    return %arg0, %arg1, %c0_i32 : i32, i32, i32
  }
}

</mosaic_0001>

<bundles_post_ra>
// kernel: tpu_custom_call.1
= control target key start
LH: loop header
LB: loop body
LE: loop exit
PB: predicated region body
PF: predicated region fallthrough
CT: control target
= control target key end

     0   :  { %s1775_s0 = inlined_call_operand.hbm [shape: f32[24], index: 0, kind: input, shape index: {}]   ;;  %s1776_s1 = inlined_call_operand.hbm [shape: f32[2,4,8,128], index: 1, kind: input, shape index: {}]   ;;  %s1777_s2 = inlined_call_operand.hbm [shape: f32[2,8,256], index: 2, kind: output, shape index: {}]  }
   0x1   :  { %1778 = sst [smem:[#allocation11_spill]] %s1775_s0 }
   0x2   :  { %7 = vsyncpa [#allocation5], 0 }
   0x3   :  { %8 = vsyncpa [#allocation3], 0 }
   0x4   :  { %10 = vsyncpa [#allocation3 + $0x1], 0 }
   0x5   :  { %11 = vsyncpa [#allocation4], 0 }
   0x6   :  { %13 = vsyncpa [#allocation4 + $0x1], 0  ;;  %s1142_s9 = smov 0   ;;  %s1144_s10 = smov 0  }
   0x7   :  { %s1146_s11 = smov 0   ;;  %s1148_s12 = smov 0  }
   0x8   :  { %s1150_s13 = smov 0   ;;  %s1152_s14 = smov 0  }
   0x9 LB: > { %s764_s15 = sadd.s32 4294967295, %s1118_s14   ;;  %s765_s16 = sadd.s32 4294967294, %s1118_s14   ;;  %s1118_s14 = sphi %s1152_s14, %s19_s14   ;;  %s1114_s13 = sphi %s1150_s13, %s1830_s13   ;;  %s1110_s12 = sphi %s1148_s12, %s1829_s12   ;;  %s1106_s11 = sphi %s1146_s11, %s1828_s11   ;;  %s1102_s10 = sphi %s1144_s10, %s1827_s10   ;;  %s1098_s9 = sphi %s1142_s9, %s1826_s9  }
   0xa   : > { %s61_s17 = sadd.s32 1, %s1106_s11  ;;  %p68_p0 = scmp.ne.s32.totalorder %s1106_s11, %s1102_s10 }
   0xb   : > { %p69_p1 = scmp.eq.s32.totalorder %s1118_s14, 0  ;;  %p74_p2 = scmp.ne.s32.totalorder %s1102_s10, %s1098_s9 }
   0xc   : > { %p1180_p3 = scmp.eq.s32.totalorder %s764_s15, 0  ;;  %p100_p4 = scmp.eq.s32.totalorder %s764_s15, 1 }
   0xd   : > { %p70_p5 = por %p69_p1, %p68_p0  ;;  %p106_p6 = scmp.eq.s32.totalorder %s765_s16, 1 }
   0xe   : > { %p1186_p7 = por %p1180_p3, %p74_p2  ;;  %p1190_p8 = por %p100_p4, %p68_p0 }
   0xf   : > { %p1194_p9 = por %p106_p6, %p74_p2  ;;  %p766_p10 = scmp.ge.s32.totalorder %s1118_s14, 1 }
  0x10   : > { %p113_p11 = scmp.lt.s32.totalorder %s1118_s14, 3  ;;  %p937_p1 = scmp.lt.s32.totalorder %s1118_s14, 2 }
  0x11   : > { %s1782_s21 = scalar_select %p1194_p9, 1, 0 }
  0x12   : > { %p1201_p13 = pnand %p766_p10, %p113_p11  ;;  %s135_s23 = sand.u32 1, %s1106_s11  }
  0x13   : > { %p1209_p2 = pnand %p937_p1, %p70_p5  ;;  %s31_s25 = sadd.s32 1, %s1114_s13 }
  0x14   : > { %p924_p0 = pneg %p1201_p13  ;;  %s769_s26 = sshll.u32 %s135_s23, 5 }
  0x15   : > { %p33_p6 = scmp.ge.s32.totalorder %s31_s25, 2  ;;  %s1120_s27 = smov [#allocation2]  }
  0x16   : > { %p925_p4 = pnand %p924_p0, %p1180_p3  ;;  %s1785_s0 = sld [smem:[#allocation11_spill]] }
  0x17   : > { %s1832_s25 = smov (%p33_p6, %s31_s25), 0  ;;  %s914_s30 = sshll.u32 %s1114_s13, 9 }
  0x18   : > { %s56_s3 = ssub.s32 %s1114_s13, %s1832_s25  ;;  %s146_s6 = scalar_lea.hbm %s1776_s1, %s914_s30 }
  0x19   : > { %p59_p5 = scmp.eq.s32.totalorder %s56_s3, 0  ;;  %s139_s7 = scalar_lea.vmem [#allocation6], %s769_s26 }
  0x1a   : > { %s147_s8 = sshll.u32 %s139_s7, 4  ;;  %s136_s16 = scalar_lea.sflag [#allocation3], %s135_s23  ;;  %s148_s8 = int_to_ptr.vmem [resolvable:$true] %s147_s8 }
  0x1b   : > { %s1230_s15 = scalar_select %p59_p5, %s1106_s11, %s61_s17  }
  0x1c   : > { %927 = dma.hbm_to_smem (!%p925_p4), %s1785_s0, 16, %s1120_s27, [#allocation5]  }
  0x1d   : > { %p1008_p10 = pneg %p1209_p2  ;;  %s1019_s27 = scalar_lea.vmem %s148_s8, 512 }
  0x1e   : > { %p1020_p11 = scmp.ne.s32.totalorder %s148_s8, %s1019_s27  ;;  %s1121_s28 = smov [#allocation6]  }
  0x1f   : > { %s1024_s29 = sshll.u32 %s1121_s28, 4  ;;  %s1025_s29 = int_to_ptr.vmem [resolvable:$false] %s1024_s29 }
  0x20   : > { %p1022_p1 = pnand %p1020_p11, %p1008_p10  ;;  %s1026_s0 = scalar_lea.vmem %s1025_s29, 1024 }
  0x21   : > { %p1027_p4 = scmp.lt.s32.totalorder %s148_s8, %s1025_s29  ;;  %p1028_p6 = scmp.lt.s32.totalorder %s1026_s0, %s1019_s27 }
  0x22   : > { %p1023_p0 = pneg %p1022_p1 }
  0x23   : > { %p1029_p12 = por %p1028_p6, %p1027_p4 }
  0x25   : > { %p1030_p9 = pnand %p1029_p12, %p1023_p0 }
  0x27   : > { %1033 = shalt.err (!%p1030_p9)
}
  0x28   : > { %s1122_s26 = smov 128   ;;  %s1123_s17 = smov 8  }
  0x29   : > { %931 = dma.hbm_to_vmem [thread:$0]  (!%p1209_p2), %s146_s6, 512, %s148_s8, %s136_s16, %s1122_s26, %s1122_s26, %s1123_s17  }
  0x2a   : > { %159 = sbr.rel (%p1201_p13) target bundleno = 353 (0x161), region = 28 }
  0x2f   : > { %1085 = dma.done.wait (%p1180_p3), [#allocation5], 16  }
  0x30   : > { %1087 = vsyncadd (%p1180_p3), [#allocation5], 4294967280  ;;  %s1243_s0 = sand.u32 1, %s1102_s10  }
  0x31   : > { %s774_s23 = sshll.u32 %s1243_s0, 5  ;;  %s166_s30 = scalar_lea.sflag [#allocation3], %s1243_s0 }
  0x32   : > { %s1247_s3 = scalar_lea.vmem [#allocation6], %s774_s23 }
  0x33   : > { %1089 = dma.done.wait (%p1186_p7), %s166_s30, 512  }
  0x34   : > { %1091 = vsyncadd (%p1186_p7), %s166_s30, 4294966784 }
  0x35   : > { %174 = sfence }
  0x36   : > { %v264_v0 = vlaneseq  ;;  %v1124_v1 = vmov 0   ;;  %s1266_s18 = smul.u32 12, %s1110_s12  ;;  %v1125_v17 = vmov 1.0|1.0   ;;  %v1394_v35 = vld [vmem:[%s1247_s3] sm:$0xff]  ;;  %v1409_v37 = vld [vmem:[%s1247_s3 + $0x8] sm:$0xff] }
  0x37   : > { %553 = vmatprep.mubr.bf16.mxu1 %v1124_v1  ;;  %512 = vmatprep.mubr.bf16.mxu0 %v1124_v1  ;;  %v1429_v43 = vld [vmem:[%s1247_s3 + $0x10] sm:$0xff]  ;;  %v1438_v45 = vld [vmem:[%s1247_s3 + $0x18] sm:$0xff] }
  0x38   : > { %v1255_v2 = vshrl.u32 %v264_v0, 7  ;;  %v1257_v3 = vand.u32 127, %v264_v0  ;;  %s208_s19 = sadd.s32 8, %s1266_s18  ;;  %s210_s22 = sadd.s32 9, %s1266_s18 }
  0x39   : > { %s1313_s24 = sld [smem:[#allocation2 + %s208_s19]]  ;;  %s212_s4 = sadd.s32 10, %s1266_s18 }
  0x3a   : > { %v279_v4 = vadd.s32 112, %v1255_v2  ;;  %v280_v5 = vadd.s32 120, %v1255_v2  ;;  %v1262_v6 = vadd.s32 128, %v1257_v3  ;;  %v277_v7 = vadd.s32 96, %v1255_v2  ;;  %s1332_s5 = sld [smem:[#allocation2 + %s210_s22]]  ;;  %s214_s6 = sadd.s32 11, %s1266_s18 }
  0x3b   : > { %v278_v8 = vadd.s32 104, %v1255_v2  ;;  %v275_v11 = vadd.s32 80, %v1255_v2  ;;  %v276_v12 = vadd.s32 88, %v1255_v2  ;;  %v273_v15 = vadd.s32 64, %v1255_v2  ;;  %s1353_s7 = sld [smem:[#allocation2 + %s212_s4]]  ;;  %s194_s16 = sadd.s32 1, %s1266_s18 }
  0x3c   : > { %v1269_v9 = vmul.u32 2, %v279_v4  ;;  %v1271_v10 = vmul.u32 2, %v280_v5  ;;  %v274_v16 = vadd.s32 72, %v1255_v2  ;;  %v271_v20 = vadd.s32 48, %v1255_v2  ;;  %s1361_s8 = sld [smem:[#allocation2 + %s214_s6]]  ;;  %s196_s29 = sadd.s32 2, %s1266_s18 }
  0x3d   : > { %v1275_v13 = vmul.u32 2, %v277_v7  ;;  %v1277_v14 = vmul.u32 2, %v278_v8  ;;  %v272_v21 = vadd.s32 56, %v1255_v2  ;;  %v269_v26 = vadd.s32 32, %v1255_v2  ;;  %s1391_s27 = sld [smem:[#allocation2 + %s1266_s18]]  ;;  %s198_s17 = sadd.s32 3, %s1266_s18 }
  0x3e   : > { %vm329_vm0 = vcmp.eq.s32.totalorder %v1262_v6, %v1269_v9  ;;  %vm331_vm1 = vcmp.eq.s32.totalorder %v1262_v6, %v1271_v10  ;;  %vm328_vm2 = vcmp.eq.s32.totalorder %v1257_v3, %v1269_v9  ;;  %vm330_vm3 = vcmp.eq.s32.totalorder %v1257_v3, %v1271_v10  ;;  %s1406_s28 = sld [smem:[#allocation2 + %s194_s16]]  ;;  %s200_s30 = sadd.s32 4, %s1266_s18 }
  0x3f   : > { %vm781_vm4 = vmpackc.low %vm331_vm1, %vm329_vm0  ;;  %vm325_vm5 = vcmp.eq.s32.totalorder %v1262_v6, %v1275_v13  ;;  %vm327_vm6 = vcmp.eq.s32.totalorder %v1262_v6, %v1277_v14  ;;  %vm324_vm7 = vcmp.eq.s32.totalorder %v1257_v3, %v1275_v13  ;;  %vm326_vm8 = vcmp.eq.s32.totalorder %v1257_v3, %v1277_v14  ;;  %s1462_s26 = sld [smem:[#allocation2 + %s196_s29]]  ;;  %s202_s3 = sadd.s32 5, %s1266_s18 }
  0x40   : > { %814 = vmatprep.subr.msk.bf16.mxu1 %vm781_vm4, %v1125_v17  ;;  %vm783_vm9 = vmpackc.low %vm330_vm3, %vm328_vm2  ;;  %782 = vmatprep.subr.msk.bf16.mxu0 %vm781_vm4, %v1125_v17  ;;  %v1301_v18 = vmul.u32 2, %v275_v11  ;;  %v1303_v19 = vmul.u32 2, %v276_v12  ;;  %v270_v27 = vadd.s32 40, %v1255_v2  ;;  %v267_v31 = vadd.s32 16, %v1255_v2  ;;  %s1495_s23 = sld [smem:[#allocation2 + %s198_s17]] }
  0x41   : > { %816 = vmatpush1.bf16.msk.msra.mxu1 %vm783_vm9, %v1125_v17  ;;  %vm785_vm10 = vmpackc.low %vm327_vm6, %vm325_vm5  ;;  %784 = vmatpush1.bf16.msk.msra.mxu0 %vm783_vm9, %v1125_v17  ;;  %v1309_v22 = vmul.u32 2, %v273_v15  ;;  %v1311_v23 = vmul.u32 2, %v274_v16  ;;  %v268_v32 = vadd.s32 24, %v1255_v2  ;;  %v245_v38 = vstv %s1313_s24  ;;  %s201_s19 = sld [smem:[#allocation2 + %s200_s30]]  ;;  %s204_s24 = sadd.s32 6, %s1266_s18 }
  0x42   : > { %818 = vmatprep.subr.msk.bf16.mxu1 %vm785_vm10, %v1125_v17  ;;  %vm1323_vm11 = vmpackc.low %vm326_vm8, %vm324_vm7  ;;  %vm321_vm12 = vcmp.eq.s32.totalorder %v1262_v6, %v1301_v18  ;;  %vm323_vm13 = vcmp.eq.s32.totalorder %v1262_v6, %v1303_v19  ;;  %786 = vmatprep.subr.msk.bf16.mxu0 %vm785_vm10, %v1125_v17  ;;  %vm320_vm15 = vcmp.eq.s32.totalorder %v1257_v3, %v1301_v18  ;;  %v1349_v28 = vmul.u32 2, %v271_v20  ;;  %s203_s22 = sld [smem:[#allocation2 + %s202_s3]] }
  0x43   : > { %vm1335_vm14 = vmpackc.low %vm323_vm13, %vm321_vm12  ;;  %vm322_vm0 = vcmp.eq.s32.totalorder %v1257_v3, %v1303_v19  ;;  %vm317_vm1 = vcmp.eq.s32.totalorder %v1262_v6, %v1309_v22  ;;  %vm319_vm2 = vcmp.eq.s32.totalorder %v1262_v6, %v1311_v23  ;;  %v1351_v29 = vmul.u32 2, %v272_v21  ;;  %s205_s4 = sld [smem:[#allocation2 + %s204_s24]] }
  0x44   : > { %vm791_vm3 = vmpackc.low %vm322_vm0, %vm320_vm15  ;;  %vm316_vm5 = vcmp.eq.s32.totalorder %v1257_v3, %v1309_v22  ;;  %vm318_vm6 = vcmp.eq.s32.totalorder %v1257_v3, %v1311_v23  ;;  %vm313_vm7 = vcmp.eq.s32.totalorder %v1262_v6, %v1349_v28  ;;  %v1384_v33 = vmul.u32 2, %v269_v26 }
  0x45   : > { %820 = vmatpush1.bf16.msk.msra.mxu1 %vm1323_vm11, %v1125_v17  ;;  %788 = vmatpush1.bf16.msk.msra.mxu0 %vm1323_vm11, %v1125_v17  ;;  %vm1369_vm4 = vmpackc.low %vm319_vm2, %vm317_vm1  ;;  %vm315_vm8 = vcmp.eq.s32.totalorder %v1262_v6, %v1351_v29  ;;  %v1386_v34 = vmul.u32 2, %v270_v27  ;;  %v247_v39 = vstv %s1332_s5  ;;  %vm312_vm11 = vcmp.eq.s32.totalorder %v1257_v3, %v1349_v28  ;;  %s206_s5 = sadd.s32 7, %s1266_s18  ;;  %s775_s18 = sshll.u32 %s1243_s0, 4 }
  0x46   : > { %822 = vmatprep.subr.msk.bf16.mxu1 %vm1335_vm14, %v1125_v17  ;;  %790 = vmatprep.subr.msk.bf16.mxu0 %vm1335_vm14, %v1125_v17  ;;  %vm1399_vm9 = vmpackc.low %vm318_vm6, %vm316_vm5  ;;  %vm314_vm12 = vcmp.eq.s32.totalorder %v1257_v3, %v1351_v29  ;;  %v1424_v41 = vmul.u32 2, %v267_v31  ;;  %v266_v42 = vadd.s32 8, %v1255_v2  ;;  %vm309_vm13 = vcmp.eq.s32.totalorder %v1262_v6, %v1384_v33  ;;  %s1548_s6 = sld [smem:[#allocation2 + %s206_s5]] }
  0x47   : > { %vm1416_vm10 = vmpackc.low %vm315_vm8, %vm313_vm7  ;;  %vm311_vm14 = vcmp.eq.s32.totalorder %v1262_v6, %v1386_v34  ;;  %v1435_v44 = vmul.u32 2, %v268_v32  ;;  %v246_v46 = vmul.f32 %v245_v38, %v1394_v35  ;;  %v248_v47 = vmul.f32 %v1409_v37, %v247_v39 }
  0x48   : > { %v250_v48 = vstv %s1353_s7  ;;  %v253_v49 = vstv %s1361_s8  ;;  %vm799_vm15 = vmpackc.low %vm314_vm12, %vm312_vm11  ;;  %vm308_vm1 = vcmp.eq.s32.totalorder %v1257_v3, %v1384_v33  ;;  %vm310_vm2 = vcmp.eq.s32.totalorder %v1257_v3, %v1386_v34  ;;  %s915_s7 = sshll.u32 %s1110_s12, 8  ;;  %s190_s8 = scalar_lea.vmem [#allocation7], %s775_s18 }
  0x49   : > { %824 = vmatpush1.bf16.msk.msra.mxu1 %vm791_vm3, %v1125_v17  ;;  %792 = vmatpush1.bf16.msk.msra.mxu0 %vm791_vm3, %v1125_v17  ;;  %v251_v50 = vmul.f32 %v1429_v43, %v250_v48  ;;  %vm1468_vm0 = vmpackc.low %vm311_vm14, %vm309_vm13  ;;  %v249_v52 = vadd.f32 %v248_v47, %v246_v46  ;;  %v254_v53 = vmul.f32 %v1438_v45, %v253_v49  ;;  %v1483_v54 = vmul.u32 2, %v1255_v2  ;;  %s669_s16 = sshll.u32 %s190_s8, 4  ;;  %s1733_s29 = scalar_lea.hbm %s1777_s2, %s915_s7  ;;  %s670_s16 = int_to_ptr.vmem [resolvable:$true] %s669_s16 }
  0x4a   : > { %826 = vmatprep.subr.msk.bf16.mxu1 %vm1369_vm4, %v1125_v17  ;;  %794 = vmatprep.subr.msk.bf16.mxu0 %vm1369_vm4, %v1125_v17  ;;  %vm305_vm3 = vcmp.eq.s32.totalorder %v1262_v6, %v1424_v41  ;;  %vm307_vm4 = vcmp.eq.s32.totalorder %v1262_v6, %v1435_v44  ;;  %v1485_v55 = vmul.u32 2, %v266_v42  ;;  %vm803_vm5 = vmpackc.low %vm310_vm2, %vm308_vm1  ;;  %v223_v57 = vstv %s1391_s27  ;;  %s1034_s17 = scalar_lea.vmem %s670_s16, 256  ;;  %s1126_s12 = smov [#allocation7]  }
  0x4b   : > { %v252_v56 = vadd.f32 %v251_v50, %v249_v52  ;;  %v225_v58 = vstv %s1406_s28  ;;  %vm1499_vm6 = vmpackc.low %vm307_vm4, %vm305_vm3  ;;  %vm304_vm7 = vcmp.eq.s32.totalorder %v1257_v3, %v1424_v41  ;;  %vm306_vm8 = vcmp.eq.s32.totalorder %v1257_v3, %v1435_v44  ;;  %p1035_p3 = scmp.ne.s32.totalorder %s670_s16, %s1034_s17 }
  0x4c   : > { %v394_v61 = vadd.s32 1, %v1269_v9  ;;  %v395_v62 = vadd.s32 1, %v1271_v10  ;;  %v224_v63 = vmul.f32 %v223_v57, %v1394_v35  ;;  %v226_v0 = vmul.f32 %v1409_v37, %v225_v58  ;;  %vm807_vm11 = vmpackc.low %vm306_vm8, %vm304_vm7 }
  0x4d   : > { %828 = vmatpush1.bf16.msk.msra.mxu1 %vm1399_vm9, %v1125_v17  ;;  %796 = vmatpush1.bf16.msk.msra.mxu0 %vm1399_vm9, %v1125_v17  ;;  %v255_v60 = vadd.f32 %v254_v53, %v252_v56  ;;  %vm301_vm9 = vcmp.eq.s32.totalorder %v1262_v6, %v1483_v54  ;;  %v228_v4 = vstv %s1462_s26  ;;  %vm300_vm13 = vcmp.eq.s32.totalorder %v1257_v3, %v1483_v54  ;;  %s653_s26 = scalar_lea.sflag [#allocation4], %s1243_s0  ;;  %p1036_p7 = pnand %p1035_p3, %p1190_p8 }
  0x4e   : > { %830 = vmatprep.subr.msk.bf16.mxu1 %vm1416_vm10, %v1125_v17  ;;  %798 = vmatprep.subr.msk.bf16.mxu0 %vm1416_vm10, %v1125_v17  ;;  %vm303_vm10 = vcmp.eq.s32.totalorder %v1262_v6, %v1485_v55  ;;  %vm302_vm14 = vcmp.eq.s32.totalorder %v1257_v3, %v1485_v55  ;;  %v227_v5 = vadd.f32 %v226_v0, %v224_v63  ;;  %v231_v8 = vstv %s1495_s23  ;;  %s1038_s23 = sshll.u32 %s1126_s12, 4  ;;  %s1039_s23 = int_to_ptr.vmem [resolvable:$false] %s1038_s23 }
  0x4f   : > { %v256_v2 = vadd.f32 1e-07, %v255_v60  ;;  %vm809_vm12 = vmpackc.low %vm303_vm10, %vm301_vm9  ;;  %v229_v7 = vmul.f32 %v1429_v43, %v228_v4  ;;  %v232_v10 = vmul.f32 %v1438_v45, %v231_v8  ;;  %v392_v15 = vadd.s32 1, %v1275_v13  ;;  %p1037_p9 = pneg %p1036_p7  ;;  %s1040_s30 = scalar_lea.vmem %s1039_s23, 512 }
  0x50   : > { %vm811_vm1 = vmpackc.low %vm302_vm14, %vm300_vm13  ;;  %v234_v16 = vstv %s201_s19  ;;  %v236_v20 = vstv %s203_s22  ;;  %v393_v24 = vadd.s32 1, %v1277_v14  ;;  %vm424_vm3 = vcmp.eq.s32.totalorder %v1257_v3, %v394_v61  ;;  %p1041_p12 = scmp.lt.s32.totalorder %s670_s16, %s1039_s23  ;;  %p1042_p13 = scmp.lt.s32.totalorder %s1040_s30, %s1034_s17 }
  0x51   : > { %832 = vmatpush1.bf16.msk.msra.mxu1 %vm799_vm15, %v1125_v17  ;;  %800 = vmatpush1.bf16.msk.msra.mxu0 %vm799_vm15, %v1125_v17  ;;  %993 = vrcp.f32 %v256_v2  ;;  %vm425_vm15 = vcmp.eq.s32.totalorder %v1262_v6, %v394_v61  ;;  %v230_v9 = vadd.f32 %v229_v7, %v227_v5  ;;  %v235_v26 = vmul.f32 %v234_v16, %v1394_v35 }
  0x52   : > { %834 = vmatprep.subr.msk.bf16.mxu1 %vm1468_vm0, %v1125_v17  ;;  %802 = vmatprep.subr.msk.bf16.mxu0 %vm1468_vm0, %v1125_v17  ;;  %vm427_vm0 = vcmp.eq.s32.totalorder %v1262_v6, %v395_v62  ;;  %v237_v27 = vmul.f32 %v1409_v37, %v236_v20  ;;  %vm426_vm4 = vcmp.eq.s32.totalorder %v1257_v3, %v395_v62  ;;  %v239_v13 = vstv %s205_s4  ;;  %p1043_p2 = por %p1042_p13, %p1041_p12 }
  0x53   : > { %vm845_vm2 = vmpackc.low %vm427_vm0, %vm425_vm15  ;;  %v233_v11 = vadd.f32 %v232_v10, %v230_v9  ;;  %v390_v31 = vadd.s32 1, %v1301_v18  ;;  %v391_v14 = vadd.s32 1, %v1303_v19  ;;  %v240_v37 = vmul.f32 %v1429_v43, %v239_v13 }
  0x54   : > { %vm1560_vm7 = vmpackc.low %vm426_vm4, %vm424_vm3  ;;  %v238_v36 = vadd.f32 %v237_v27, %v235_v26  ;;  %vm420_vm9 = vcmp.eq.s32.totalorder %v1257_v3, %v392_v15  ;;  %vm422_vm10 = vcmp.eq.s32.totalorder %v1257_v3, %v393_v24  ;;  %v388_v18 = vadd.s32 1, %v1309_v22  ;;  %p1044_p5 = pnand %p1043_p2, %p1037_p9 }
  0x55   : > { %836 = vmatpush1.bf16.msk.msra.mxu1 %vm803_vm5, %v1125_v17  ;;  %804 = vmatpush1.bf16.msk.msra.mxu0 %vm803_vm5, %v1125_v17  ;;  %vm421_vm5 = vcmp.eq.s32.totalorder %v1262_v6, %v392_v15  ;;  %v242_v39 = vstv %s1548_s6  ;;  %v389_v40 = vadd.s32 1, %v1311_v23  ;;  %vm1583_vm13 = vmpackc.low %vm422_vm10, %vm420_vm9  ;;  %vm416_vm15 = vcmp.eq.s32.totalorder %v1257_v3, %v390_v31 }
  0x56   : > { %838 = vmatprep.subr.msk.bf16.mxu1 %vm1499_vm6, %v1125_v17  ;;  %806 = vmatprep.subr.msk.bf16.mxu0 %vm1499_vm6, %v1125_v17  ;;  %vm423_vm6 = vcmp.eq.s32.totalorder %v1262_v6, %v393_v24  ;;  %v241_v43 = vadd.f32 %v240_v37, %v238_v36  ;;  %v243_v46 = vmul.f32 %v1438_v45, %v242_v39  ;;  %v386_v48 = vadd.s32 1, %v1349_v28 }
  0x57   : > { %vm1565_vm8 = vmpackc.low %vm423_vm6, %vm421_vm5  ;;  %vm418_vm0 = vcmp.eq.s32.totalorder %v1257_v3, %v391_v14  ;;  %v387_v49 = vadd.s32 1, %v1351_v29  ;;  %vm412_vm5 = vcmp.eq.s32.totalorder %v1257_v3, %v388_v18  ;;  %vm414_vm6 = vcmp.eq.s32.totalorder %v1257_v3, %v389_v40 }
  0x58   : > { %vm1604_vm3 = vmpackc.low %vm418_vm0, %vm416_vm15  ;;  %v244_v50 = vadd.f32 %v243_v46, %v241_v43  ;;  %vm409_vm9 = vcmp.eq.s32.totalorder %v1262_v6, %v386_v48  ;;  %v384_v29 = vadd.s32 1, %v1384_v33  ;;  %v385_v51 = vadd.s32 1, %v1386_v34 }
  0x59   : > { %840 = vmatpush1.bf16.msk.msra.mxu1 %vm807_vm11, %v1125_v17  ;;  %808 = vmatpush1.bf16.msk.msra.mxu0 %vm807_vm11, %v1125_v17  ;;  %vm417_vm11 = vcmp.eq.s32.totalorder %v1262_v6, %v390_v31  ;;  %vm411_vm10 = vcmp.eq.s32.totalorder %v1262_v6, %v387_v49  ;;  %v382_v34 = vadd.s32 1, %v1424_v41  ;;  %v383_v53 = vadd.s32 1, %v1435_v44 }
  0x5a   : > { %842 = vmatprep.subr.msk.bf16.mxu1 %vm809_vm12, %v1125_v17  ;;  %810 = vmatprep.subr.msk.bf16.mxu0 %vm809_vm12, %v1125_v17  ;;  %vm419_vm12 = vcmp.eq.s32.totalorder %v1262_v6, %v391_v14  ;;  %vm405_vm15 = vcmp.eq.s32.totalorder %v1262_v6, %v384_v29  ;;  %vm407_vm0 = vcmp.eq.s32.totalorder %v1262_v6, %v385_v51  ;;  %v380_v44 = vadd.s32 1, %v1483_v54 }
  0x5b   : > { %vm1588_vm14 = vmpackc.low %vm419_vm12, %vm417_vm11  ;;  %vm408_vm11 = vcmp.eq.s32.totalorder %v1257_v3, %v386_v48  ;;  %vm410_vm12 = vcmp.eq.s32.totalorder %v1257_v3, %v387_v49  ;;  %v381_v58 = vadd.s32 1, %v1485_v55 }
  0x5d   : > { %844 = vmatpush1.bf16.msk.msra.mxu1 %vm811_vm1, %v1125_v17  ;;  %812 = vmatpush1.bf16.msk.msra.mxu0 %vm811_vm1, %v1125_v17  ;;  %vm413_vm1 = vcmp.eq.s32.totalorder %v1262_v6, %v388_v18 }
  0x5e   : > { %878 = vmatprep.subr.msk.bf16.mxu1 %vm845_vm2, %v1125_v17  ;;  %846 = vmatprep.subr.msk.bf16.mxu0 %vm845_vm2, %v1125_v17  ;;  %v1545_v12 = vpop.eup %993  ;;  %vm415_vm2 = vcmp.eq.s32.totalorder %v1262_v6, %v389_v40 }
  0x5f   : > { %v258_v21 = vmul.f32 %v1545_v12, %v233_v11  ;;  %vm1611_vm4 = vmpackc.low %vm415_vm2, %vm413_vm1  ;;  %v261_v52 = vmul.f32 %v1545_v12, %v244_v50  ;;  %vm404_vm1 = vcmp.eq.s32.totalorder %v1257_v3, %v384_v29  ;;  %vm406_vm2 = vcmp.eq.s32.totalorder %v1257_v3, %v385_v51 }
  0x61   : > { %v259_v25 = vmul.f32 0.031746034, %v258_v21  ;;  %v262_v57 = vmul.f32 0.13333334, %v261_v52 }
  0x63   : > { %v779_v30 = vadd.f32 -1.0, %v259_v25  ;;  %v780_v60 = vadd.f32 -1.0, %v262_v57 }
  0x65   : > { %v476_v32 = vpack.c.bf16 %v779_v30, %v779_v30  ;;  %v562_v55 = vpack.c.bf16 %v780_v60, %v780_v60 }
  0x67   : > { %v477_v19 = vunpack.c.l.bf16 %v476_v32  ;;  %554 = vmatmul.mubr.bf16.vlgmr.msra.gmra.mxu1 %v476_v32 }
  0x68   : > { %880 = vmatpush1.bf16.msk.msra.mxu1 %vm1560_vm7, %v1125_v17  ;;  %639 = vmatprep.mubr.bf16.mxu1 %v1124_v1 }
  0x69   : > { %882 = vmatprep.subr.msk.bf16.mxu1 %vm1565_vm8, %v1125_v17  ;;  %v478_v42 = vsub.f32 %v779_v30, %v477_v19 }
  0x6b   : > { %v479_v47 = vpack.c.bf16 %v478_v42, %v478_v42 }
  0x6c   : > { %884 = vmatpush1.bf16.msk.msra.mxu1 %vm1583_vm13, %v1125_v17 }
  0x6d   : > { %513 = vmatmul.mubr.bf16.vlgmr.msra.gmra.mxu0 %v479_v47  ;;  %886 = vmatprep.subr.msk.bf16.mxu1 %vm1588_vm14, %v1125_v17 }
  0x6e   : > { %848 = vmatpush1.bf16.msk.msra.mxu0 %vm1560_vm7, %v1125_v17  ;;  %598 = vmatprep.mubr.bf16.mxu0 %v1124_v1  ;;  %vm1631_vm7 = vmpackc.low %vm414_vm6, %vm412_vm5  ;;  %vm401_vm5 = vcmp.eq.s32.totalorder %v1262_v6, %v382_v34  ;;  %vm403_vm6 = vcmp.eq.s32.totalorder %v1262_v6, %v383_v53 }
  0x6f   : > { %850 = vmatprep.subr.msk.bf16.mxu0 %vm1565_vm8, %v1125_v17  ;;  %vm1639_vm8 = vmpackc.low %vm411_vm10, %vm409_vm9  ;;  %vm400_vm9 = vcmp.eq.s32.totalorder %v1257_v3, %v382_v34  ;;  %vm402_vm10 = vcmp.eq.s32.totalorder %v1257_v3, %v383_v53 }
  0x70   : > { %888 = vmatpush1.bf16.msk.msra.mxu1 %vm1604_vm3, %v1125_v17 }
  0x71   : > { %890 = vmatprep.subr.msk.bf16.mxu1 %vm1611_vm4, %v1125_v17 }
  0x72   : > { %852 = vmatpush1.bf16.msk.msra.mxu0 %vm1583_vm13, %v1125_v17  ;;  %vm1658_vm13 = vmpackc.low %vm410_vm12, %vm408_vm11  ;;  %vm397_vm11 = vcmp.eq.s32.totalorder %v1262_v6, %v380_v44  ;;  %vm399_vm12 = vcmp.eq.s32.totalorder %v1262_v6, %v381_v58  ;;  %v563_v6 = vunpack.c.l.bf16 %v562_v55 }
  0x73   : > { %854 = vmatprep.subr.msk.bf16.mxu0 %vm1588_vm14, %v1125_v17  ;;  %vm1665_vm14 = vmpackc.low %vm407_vm0, %vm405_vm15  ;;  %vm398_vm0 = vcmp.eq.s32.totalorder %v1257_v3, %v381_v58 }
  0x74   : > { %892 = vmatpush1.bf16.msk.msra.mxu1 %vm1631_vm7, %v1125_v17  ;;  %vm873_vm15 = vmpackc.low %vm399_vm12, %vm397_vm11 }
  0x75   : > { %894 = vmatprep.subr.msk.bf16.mxu1 %vm1639_vm8, %v1125_v17 }
  0x76   : > { %856 = vmatpush1.bf16.msk.msra.mxu0 %vm1604_vm3, %v1125_v17  ;;  %vm1684_vm3 = vmpackc.low %vm406_vm2, %vm404_vm1 }
  0x77   : > { %858 = vmatprep.subr.msk.bf16.mxu0 %vm1611_vm4, %v1125_v17  ;;  %vm1691_vm4 = vmpackc.low %vm403_vm6, %vm401_vm5 }
  0x78   : > { %896 = vmatpush1.bf16.msk.msra.mxu1 %vm1658_vm13, %v1125_v17 }
  0x79   : > { %898 = vmatprep.subr.msk.bf16.mxu1 %vm1665_vm14, %v1125_v17 }
  0x7a   : > { %860 = vmatpush1.bf16.msk.msra.mxu0 %vm1631_vm7, %v1125_v17  ;;  %vm871_vm7 = vmpackc.low %vm402_vm10, %vm400_vm9 }
  0x7b   : > { %862 = vmatprep.subr.msk.bf16.mxu0 %vm1639_vm8, %v1125_v17  ;;  %vm396_vm8 = vcmp.eq.s32.totalorder %v1257_v3, %v380_v44  ;;  %v564_v3 = vsub.f32 %v780_v60, %v563_v6 }
  0x7c   : > { %900 = vmatpush1.bf16.msk.msra.mxu1 %vm1684_vm3, %v1125_v17  ;;  %vm875_vm1 = vmpackc.low %vm398_vm0, %vm396_vm8 }
  0x7d   : > { %902 = vmatprep.subr.msk.bf16.mxu1 %vm1691_vm4, %v1125_v17  ;;  %v565_v61 = vpack.c.bf16 %v564_v3, %v564_v3 }
  0x7e   : > { %864 = vmatpush1.bf16.msk.msra.mxu0 %vm1658_vm13, %v1125_v17 }
  0x7f   : > { %866 = vmatprep.subr.msk.bf16.mxu0 %vm1665_vm14, %v1125_v17 }
  0x80   : > { %904 = vmatpush1.bf16.msk.msra.mxu1 %vm871_vm7, %v1125_v17 }
  0x81   : > { %906 = vmatprep.subr.msk.bf16.mxu1 %vm873_vm15, %v1125_v17 }
  0x82   : > { %868 = vmatpush1.bf16.msk.msra.mxu0 %vm1684_vm3, %v1125_v17 }
  0x83   : > { %870 = vmatprep.subr.msk.bf16.mxu0 %vm1691_vm4, %v1125_v17 }
  0x84   : > { %908 = vmatpush1.bf16.msk.msra.mxu1 %vm875_vm1, %v1125_v17 }
  0x86   : > { %872 = vmatpush1.bf16.msk.msra.mxu0 %vm871_vm7, %v1125_v17 }
  0x87   : > { %640 = vmatmul.mubr.bf16.vlgmr.msra.gmra.mxu1 %v562_v55  ;;  %874 = vmatprep.subr.msk.bf16.mxu0 %vm873_vm15, %v1125_v17 }
  0x8a   : > { %876 = vmatpush1.bf16.msk.msra.mxu0 %vm875_vm1, %v1125_v17 }
  0x8d   : > { %599 = vmatmul.mubr.bf16.vlgmr.msra.gmra.mxu0 %v565_v61 }
 0x127   : > { %v555_v62 = vpop.f32.mrf.mxu1 }
 0x129   : > { %v557_v63 = vpop.f32.mrf.mxu1 }
 0x12b   : > { %v559_v0 = vpop.f32.mrf.mxu1 }
 0x12d   : > { %v514_v2 = vpop.f32.mrf.mxu0  ;;  %v560_v4 = vpop.f32.mrf.mxu1 }
 0x12e   : > { %v556_v16 = vadd.f32 %v555_v62, %v514_v2 }
 0x12f   : > { %v516_v5 = vpop.f32.mrf.mxu0 }
 0x130   : > { %v558_v21 = vadd.f32 %v557_v63, %v516_v5 }
 0x131   : > { %v518_v7 = vpop.f32.mrf.mxu0 }
 0x133   : > { %v519_v8 = vpop.f32.mrf.mxu0 }
 0x147   : > { %v641_v9 = vpop.f32.mrf.mxu1 }
 0x149   : > { %v643_v10 = vpop.f32.mrf.mxu1 }
 0x14b   : > { %v645_v11 = vpop.f32.mrf.mxu1 }
 0x14d   : > { %v600_v12 = vpop.f32.mrf.mxu0  ;;  %v646_v15 = vpop.f32.mrf.mxu1 }
 0x14e   : > { %v642_v20 = vadd.f32 %v641_v9, %v600_v12 }
 0x14f   : > { %v602_v17 = vpop.f32.mrf.mxu0 }
 0x150   : > { %v648_v24 = vadd.f32 %v642_v20, %v556_v16  ;;  %v644_v25 = vadd.f32 %v643_v10, %v602_v17 }
 0x151   : > { %v604_v26 = vpop.f32.mrf.mxu0 }
 0x152   : > { %650 = vst [vmem:[%s190_s8] sm:$0xff] %v648_v24  ;;  %v649_v27 = vadd.f32 %v644_v25, %v558_v21 }
 0x153   : > { %v605_v13 = vpop.f32.mrf.mxu0 }
 0x154   : > { %651 = vst [vmem:[%s190_s8 + $0x8] sm:$0xff] %v649_v27 }
 0x155   : > { %1047 = shalt.err (!%p1044_p5)
}
 0x156   : > { %s1048_s3 = scalar_lea.hbm %s1733_s29, 256  ;;  %s1052_s22 = scalar_lea.hbm %s1777_s2, 512 }
 0x157   : > { %p1049_p10 = scmp.ne.s32.totalorder %s1733_s29, %s1048_s3  ;;  %p1053_p0 = scmp.lt.s32.totalorder %s1733_s29, %s1777_s2 }
 0x158   : > { %p1054_p4 = scmp.lt.s32.totalorder %s1052_s22, %s1048_s3 }
 0x159   : > { %p1050_p11 = pnand %p1049_p10, %p1190_p8 }
 0x15a   : > { %p1055_p6 = por %p1054_p4, %p1053_p0 }
 0x15b   : > { %p1051_p1 = pneg %p1050_p11 }
 0x15d   : > { %p1056_p3 = pnand %p1055_p6, %p1051_p1 }
 0x15f   : > { %1059 = shalt.err (!%p1056_p3)
}
 0x160   : > { %922 = dma.vmem_to_hbm [thread:$0]  (%p1190_p8), %s670_s16, 256, %s1733_s29, %s653_s26  }
 0x161 PF: > { %s681_s5 = sand.u32 1, %s1098_s9   ;;  %p1824_p7 = scmp.ne.s32.totalorder %s1782_s21, 0 }
 0x162   : > { %p1825_p9 = scmp.ge.s32.totalorder %s1118_s14, 2  ;;  %s682_s6 = scalar_lea.sflag [#allocation4], %s681_s5 }
 0x164   : > { %p933_p12 = pnand %p1825_p9, %p1824_p7 }
 0x166   : > { %p934_p13 = pneg %p933_p12 }
 0x168   : > { %1093 = dma.done.wait (%p934_p13), %s682_s6, 256  }
 0x169   : > { %1095 = vsyncadd (%p934_p13), %s682_s6, 4294967040  ;;  %s19_s14 = sadd.s32 1, %s1118_s14   ;;  %s1826_s9 = smov %s1102_s10 }
 0x16a   : > { %p16_p2 = scmp.ge.s32.totalorder %s19_s14, 4   ;;  %s1827_s10 = smov %s1106_s11 }
 0x16b   : > { %s1828_s11 = smov %s1230_s15  ;;  %s1829_s12 = smov %s1114_s13 }
 0x16c   : > { %s1830_s13 = smov %s1832_s25  ;;  %18 = sbr.rel (!%p16_p2) target bundleno = 9 (0x9), region = 81 }
 0x171   :  { %687 = vsyncpa [#allocation3], 1 }
 0x172   :  { %689 = vsyncpa [#allocation3 + $0x1], 1 }
 0x173   :  { %690 = vsyncpa [#allocation4], 1 }
 0x174   :  { %692 = vsyncpa [#allocation4 + $0x1], 1 }
 0x175   :  { %693 = vsyncpa [#allocation5], 1 }
 0x176   :  { %695 = vsyncpa [#allocation5 + $0x1], 1 }

</bundles_post_ra>
